<compile_context>
chip_gen: v7x
topology: tpu7x:2x2x1
jax: 0.10.0
libtpu: 0.0.40
codegen_flags: <defaults>
</compile_context>

<pallas_src>
import functools

import jax
import jax.numpy as jnp
from jax import lax
from jax.experimental import pallas as pl
from jax.experimental.pallas import tpu as pltpu


def _round_up(n, m):
    return ((n + m - 1) // m) * m


def _mlp_head_kernel(x_ref, w1_ref, b1_ref, w2_ref, b2_ref, w3_ref, b3_ref,
                     o_ref):
    """One (TB, H) batch tile: fc1 -> ReLU -> fc2 -> ReLU -> outfc.

    Output is written lane-dense as a (1, TB) row (batch on the lane axis).
    """
    cdt = w1_ref.dtype                                   # compute dtype (bf16 / f32)
    x = x_ref[...].astype(cdt)                           # no-op if caller sent bf16

    h1 = jnp.dot(x, w1_ref[...], preferred_element_type=jnp.float32)
    h1 = jnp.maximum(h1 + b1_ref[...], 0.0)              # f32 bias + ReLU on the VPU

    h2 = jnp.dot(h1.astype(cdt), w2_ref[...], preferred_element_type=jnp.float32)
    h2 = jnp.maximum(h2 + b2_ref[...], 0.0)

    # outfc (output width 1): (1, H4) x (TB, H4)^T -> (1, TB).  The result is
    # produced directly in the lane-dense layout the output block wants, so the
    # writeback is full-width stores instead of a masked (TB, 1) column.
    y = lax.dot_general(w3_ref[...], h2.astype(cdt),
                        dimension_numbers=(((1,), (1,)), ((), ())),
                        preferred_element_type=jnp.float32)
    o_ref[...] = (y + b3_ref[...]).astype(o_ref.dtype)


_VMEM_BUDGET_BYTES = None


def _vmem_budget_bytes():
    """~3/4 of physical VMEM: ~48 MiB on v7x (64 MiB), ~96 MiB on v5e/v6e."""
    global _VMEM_BUDGET_BYTES
    if _VMEM_BUDGET_BYTES is None:
        try:
            cap = int(pltpu.get_tpu_info().vmem_capacity_bytes)
        except Exception:
            cap = 64 * 1024 * 1024               # conservative (v7x-sized) fallback
        _VMEM_BUDGET_BYTES = cap * 3 // 4
    return _VMEM_BUDGET_BYTES


def _choose_tb(B, H, H2, H4, x_bytes, w_bytes, budget):
    """Largest batch tile such that (a) double-buffered x tiles + resident
    (single-buffered) weights + f32 temps fit the VMEM budget and (b) the grid
    has >= 4 steps so both v7x TensorCores get work and DMA overlaps compute."""
    sub = 8 * max(1, 4 // x_bytes)               # sublane multiple: 8 (f32) / 16 (bf16)
    if B <= 128:
        # Tiny batches: single (or near-single) block; tiling levers don't apply.
        return _round_up(B, sub)

    def vmem_est(tb):
        x_buf = 2 * tb * H * x_bytes                       # double-buffered x stream
        w_buf = (H * H2 + H2 * H4 + H4) * w_bytes          # resident weights (1 buffer)
        b_buf = (H2 + H4 + 1) * 4 * 2
        tmp = tb * (H2 + H4) * (4 + w_bytes)               # f32 h1/h2 + cast copies
        out_buf = 2 * 8 * tb * 4                           # (1, TB) f32, padded sublanes
        return x_buf + w_buf + b_buf + tmp + out_buf

    tb = 1024
    while tb > 128 and (vmem_est(tb) > budget or pl.cdiv(B, tb) < 4):
        tb //= 2
    return tb


@functools.partial(jax.jit, static_argnames=("use_bf16", "single_buffer_weights"))
def _forward(x, w1, b1, w2, b2, w3, b3, *, use_bf16=True,
             single_buffer_weights=True):
    B, H = x.shape
    H2 = w1.shape[1]
    H4 = w2.shape[1]

    cdt = jnp.bfloat16 if use_bf16 else jnp.float32
    w_bytes = jnp.dtype(cdt).itemsize
    x_bytes = x.dtype.itemsize

    budget = _vmem_budget_bytes()
    TB = _choose_tb(B, H, H2, H4, x_bytes, w_bytes, budget)
    # Ragged last block instead of jnp.pad (no extra HBM read+write of x);
    # garbage rows in the padded tail are sliced off below.
    nblk = pl.cdiv(B, TB)

    # Resident params: weights in the compute dtype (one-time tiny cast),
    # biases stay f32 for the VPU bias+ReLU.
    w1c = w1.astype(cdt)
    w2c = w2.astype(cdt)
    w3c = w3.reshape(1, H4).astype(cdt)
    b1f = b1.reshape(1, H2).astype(jnp.float32)
    b2f = b2.reshape(1, H4).astype(jnp.float32)
    b3f = b3.reshape(1, 1).astype(jnp.float32)

    const = lambda i: (0, 0)        # pin weights/biases: same block every iteration
    if single_buffer_weights:
        # Constant index_map -> a second pipeline buffer is pure VMEM waste.
        # Matters for large H on v7x's 64 MiB VMEM.
        wspec = lambda shape: pl.BlockSpec(shape, const,
                                           pipeline_mode=pl.Buffered(1))
    else:
        wspec = lambda shape: pl.BlockSpec(shape, const)

    flops = 2 * nblk * TB * (H * H2 + H2 * H4 + H4)
    bytes_accessed = (nblk * TB * H * x_bytes                # x stream
                      + (H * H2 + H2 * H4 + H4) * w_bytes    # weights (read once)
                      + (H2 + H4 + 1) * 4                    # biases
                      + nblk * TB * 4)                       # output

    out = pl.pallas_call(
        _mlp_head_kernel,
        out_shape=jax.ShapeDtypeStruct((1, nblk * TB), jnp.float32),
        grid=(nblk,),
        in_specs=[
            pl.BlockSpec((TB, H), lambda i: (i, 0)),   # batch-tiled activations
            wspec((H, H2)),                            # fc1 weight (VMEM resident)
            pl.BlockSpec((1, H2), const),              # fc1 bias
            wspec((H2, H4)),                           # fc2 weight (VMEM resident)
            pl.BlockSpec((1, H4), const),              # fc2 bias
            pl.BlockSpec((1, H4), const),              # outfc weight as a row
            pl.BlockSpec((1, 1), const),               # outfc bias
        ],
        out_specs=pl.BlockSpec((1, TB), lambda i: (0, i)),   # lane-dense output row
        compiler_params=pltpu.CompilerParams(
            dimension_semantics=("parallel",),          # megacore sharding on v7x
            vmem_limit_bytes=budget,
        ),
        cost_estimate=pl.CostEstimate(
            flops=flops, transcendentals=0, bytes_accessed=bytes_accessed),
    )(x, w1c, b1f, w2c, b2f, w3c, b3f)

    # Drop the ragged-tile tail, then .squeeze() glue (0-d scalar when B == 1,
    # matching PyTorch).
    return jnp.squeeze(out[0, :B])


_SINGLE_BUFFER_OK = None


def graph_regression_head(x, w1, b1, w2, b2, w3, b3, *, use_bf16=True):
    """JAX/Pallas equivalent of GraphRegressionHead.forward.

    x: (B, H) in f32 (or bf16 for the halved-HBM fast path); w1: (H, H//2);
    w2: (H//2, H//4); w3: (H//4, 1); biases b*: (1, fan_out).
    use_bf16=False keeps f32 MXU operands for closer parity with the f32 module.
    """
    global _SINGLE_BUFFER_OK
    if _SINGLE_BUFFER_OK is None:
        try:
            y = _forward(x, w1, b1, w2, b2, w3, b3, use_bf16=use_bf16,
                         single_buffer_weights=True)
            jax.block_until_ready(y)
            _SINGLE_BUFFER_OK = True
            return y
        except Exception:
            # pipeline_mode=pl.Buffered(1) not available on this jax build:
            # fall back to default double-buffered weights (correct, more VMEM).
            _SINGLE_BUFFER_OK = False
    return _forward(x, w1, b1, w2, b2, w3, b3, use_bf16=use_bf16,
                    single_buffer_weights=_SINGLE_BUFFER_OK)


def init_params(key, n_hidden):
    """Deterministic init mirroring nn.Linear's U(-1/sqrt(fan_in), +1/sqrt(fan_in))."""
    dims = [(n_hidden, n_hidden // 2),
            (n_hidden // 2, n_hidden // 4),
            (n_hidden // 4, 1)]
    params = []
    for (fan_in, fan_out) in dims:
        key, kw, kb = jax.random.split(key, 3)
        bound = 1.0 / jnp.sqrt(fan_in)
        w = jax.random.uniform(kw, (fan_in, fan_out), jnp.float32, -bound, bound)
        b = jax.random.uniform(kb, (1, fan_out), jnp.float32, -bound, bound)
        params += [w, b]
    return params


if __name__ == "__main__":
    import numpy as np

    key = jax.random.PRNGKey(0)
    # NOTE: tiny shapes for the smoke test — performance levers only show at
    # production sizes (H >= 512, B >= 4096), where TB/grid selection kicks in.
    batch, n_hidden = 8, 32

    kx, kp = jax.random.split(key)
    x = jax.random.normal(kx, (batch, n_hidden), jnp.float32)
    w1, b1, w2, b2, w3, b3 = init_params(kp, n_hidden)

    y = graph_regression_head(x, w1, b1, w2, b2, w3, b3)
    jax.block_until_ready(y)
    assert y.shape == (batch,)

    # Reference 1: mimic kernel numerics (bf16 MXU operands, f32 accumulation).
    bf = jnp.bfloat16
    h = jnp.maximum(jnp.dot(x.astype(bf), w1.astype(bf),
                            preferred_element_type=jnp.float32) + b1, 0.0)
    h = jnp.maximum(jnp.dot(h.astype(bf), w2.astype(bf),
                            preferred_element_type=jnp.float32) + b2, 0.0)
    y_bf16_ref = jnp.dot(h.astype(bf), w3.astype(bf),
                         preferred_element_type=jnp.float32)[:, 0] + b3[0, 0]
    assert jnp.allclose(y, y_bf16_ref, atol=2e-3, rtol=2e-3)

    # Reference 2: the module's pure-f32 forward (numpy), loose tol for bf16.
    hn = np.maximum(np.asarray(x) @ np.asarray(w1) + np.asarray(b1), 0.0)
    hn = np.maximum(hn @ np.asarray(w2) + np.asarray(b2), 0.0)
    y_f32_ref = np.squeeze(hn @ np.asarray(w3) + np.asarray(b3))
    assert np.allclose(np.asarray(y), y_f32_ref, atol=5e-2, rtol=5e-2)

    # f32 compute path (parity option from the correctness review).
    y32 = graph_regression_head(x, w1, b1, w2, b2, w3, b3, use_bf16=False)
    jax.block_until_ready(y32)
    assert y32.shape == (batch,)
    assert np.allclose(np.asarray(y32), y_f32_ref, atol=5e-2, rtol=5e-2)

    print("KERNEL_OK")
</pallas_src>

<mosaic_0001>
module attributes {stable_mosaic.version = 11 : i64} {
  func.func @_mlp_head_kernel(%arg0: i32, %arg1: memref<8x32xf32, #tpu.memory_space<vmem>>, %arg2: memref<32x16xbf16, #tpu.memory_space<vmem>>, %arg3: memref<1x16xf32, #tpu.memory_space<vmem>>, %arg4: memref<16x8xbf16, #tpu.memory_space<vmem>>, %arg5: memref<1x8xf32, #tpu.memory_space<vmem>>, %arg6: memref<1x8xbf16, #tpu.memory_space<vmem>>, %arg7: memref<1x1xf32, #tpu.memory_space<vmem>>, %arg8: memref<1x8xf32, #tpu.memory_space<vmem>>) attributes {dimension_semantics = [#tpu.dimension_semantics<parallel>], iteration_bounds = array<i64: 1>, scalar_prefetch = 0 : i64, scratch_operands = 0 : i64, tpu.core_type = #tpu.core_type<tc>, window_params = [{transform_indices = @transform_0, window_bounds = array<i64: 8, 32>}, {pipeline_mode = #tpu.pipeline_mode<synchronous>, transform_indices = @transform_1, window_bounds = array<i64: 32, 16>}, {pipeline_mode = #tpu.pipeline_mode<synchronous>, transform_indices = @transform_2, window_bounds = array<i64: 1, 16>}, {pipeline_mode = #tpu.pipeline_mode<synchronous>, transform_indices = @transform_3, window_bounds = array<i64: 16, 8>}, {pipeline_mode = #tpu.pipeline_mode<synchronous>, transform_indices = @transform_4, window_bounds = array<i64: 1, 8>}, {pipeline_mode = #tpu.pipeline_mode<synchronous>, transform_indices = @transform_5, window_bounds = array<i64: 1, 8>}, {pipeline_mode = #tpu.pipeline_mode<synchronous>, transform_indices = @transform_6, window_bounds = array<i64: 1, 1>}, {transform_indices = @transform_7, window_bounds = array<i64: 1, 8>}]} {
    %c0 = arith.constant 0 : index
    %c0_0 = arith.constant 0 : index
    %0 = vector.load %arg1[%c0, %c0_0] : memref<8x32xf32, #tpu.memory_space<vmem>>, vector<8x32xf32>
    %1 = arith.truncf %0 : vector<8x32xf32> to vector<8x32xbf16>
    %c0_1 = arith.constant 0 : index
    %c0_2 = arith.constant 0 : index
    %2 = vector.load %arg2[%c0_1, %c0_2] : memref<32x16xbf16, #tpu.memory_space<vmem>>, vector<32x16xbf16>
    %cst = arith.constant dense<0.000000e+00> : vector<8x16xf32>
    %3 = tpu.matmul %1, %2, %cst {dimension_numbers = #tpu.dot_dimension_numbers<[1], [0], [0], [1], [0, 0, 1, 1], [], []>} : vector<8x32xbf16>, vector<32x16xbf16>, vector<8x16xf32> -> vector<8x16xf32>
    %c0_3 = arith.constant 0 : index
    %c0_4 = arith.constant 0 : index
    %4 = vector.load %arg3[%c0_3, %c0_4] : memref<1x16xf32, #tpu.memory_space<vmem>>, vector<1x16xf32>
    %5 = vector.broadcast %4 : vector<1x16xf32> to vector<8x16xf32>
    %6 = arith.addf %3, %5 : vector<8x16xf32>
    %cst_5 = arith.constant 0.000000e+00 : f32
    %7 = vector.broadcast %cst_5 : f32 to vector<8x16xf32>
    %8 = arith.maximumf %6, %7 : vector<8x16xf32>
    %9 = arith.truncf %8 : vector<8x16xf32> to vector<8x16xbf16>
    %c0_6 = arith.constant 0 : index
    %c0_7 = arith.constant 0 : index
    %10 = vector.load %arg4[%c0_6, %c0_7] : memref<16x8xbf16, #tpu.memory_space<vmem>>, vector<16x8xbf16>
    %cst_8 = arith.constant dense<0.000000e+00> : vector<8x8xf32>
    %11 = tpu.matmul %9, %10, %cst_8 {dimension_numbers = #tpu.dot_dimension_numbers<[1], [0], [0], [1], [0, 0, 1, 1], [], []>} : vector<8x16xbf16>, vector<16x8xbf16>, vector<8x8xf32> -> vector<8x8xf32>
    %c0_9 = arith.constant 0 : index
    %c0_10 = arith.constant 0 : index
    %12 = vector.load %arg5[%c0_9, %c0_10] : memref<1x8xf32, #tpu.memory_space<vmem>>, vector<1x8xf32>
    %13 = vector.broadcast %12 : vector<1x8xf32> to vector<8x8xf32>
    %14 = arith.addf %11, %13 : vector<8x8xf32>
    %cst_11 = arith.constant 0.000000e+00 : f32
    %15 = vector.broadcast %cst_11 : f32 to vector<8x8xf32>
    %16 = arith.maximumf %14, %15 : vector<8x8xf32>
    %c0_12 = arith.constant 0 : index
    %c0_13 = arith.constant 0 : index
    %17 = vector.load %arg6[%c0_12, %c0_13] : memref<1x8xbf16, #tpu.memory_space<vmem>>, vector<1x8xbf16>
    %18 = arith.truncf %16 : vector<8x8xf32> to vector<8x8xbf16>
    %cst_14 = arith.constant dense<0.000000e+00> : vector<1x8xf32>
    %19 = tpu.matmul %17, %18, %cst_14 {dimension_numbers = #tpu.dot_dimension_numbers<[1], [1], [0], [0], [0, 0, 1, 0], [], []>} : vector<1x8xbf16>, vector<8x8xbf16>, vector<1x8xf32> -> vector<1x8xf32>
    %c0_15 = arith.constant 0 : index
    %c0_16 = arith.constant 0 : index
    %20 = vector.load %arg7[%c0_15, %c0_16] : memref<1x1xf32, #tpu.memory_space<vmem>>, vector<1x1xf32>
    %21 = vector.broadcast %20 : vector<1x1xf32> to vector<1x8xf32>
    %22 = arith.addf %19, %21 : vector<1x8xf32>
    %c0_17 = arith.constant 0 : index
    %c0_18 = arith.constant 0 : index
    %23 = vector.load %arg8[%c0_17, %c0_18] : memref<1x8xf32, #tpu.memory_space<vmem>>, vector<1x8xf32>
    tpu.vector_store %arg8[%c0_17, %c0_18], %22 {strides = array<i32>} : memref<1x8xf32, #tpu.memory_space<vmem>>, vector<1x8xf32>,
    return
  }
  func.func @transform_0(%arg0: i32) -> (i32, i32) {
    %c0_i32 = arith.constant 0 : i32
    %c0_i32_0 = arith.constant 0 : i32
    return %arg0, %c0_i32 : i32, i32
  }
  func.func @transform_1(%arg0: i32) -> (i32, i32) {
    %c0_i32 = arith.constant 0 : i32
    %c0_i32_0 = arith.constant 0 : i32
    %c0_i32_1 = arith.constant 0 : i32
    return %c0_i32, %c0_i32_0 : i32, i32
  }
  func.func @transform_2(%arg0: i32) -> (i32, i32) {
    %c0_i32 = arith.constant 0 : i32
    %c0_i32_0 = arith.constant 0 : i32
    %c0_i32_1 = arith.constant 0 : i32
    return %c0_i32, %c0_i32_0 : i32, i32
  }
  func.func @transform_3(%arg0: i32) -> (i32, i32) {
    %c0_i32 = arith.constant 0 : i32
    %c0_i32_0 = arith.constant 0 : i32
    %c0_i32_1 = arith.constant 0 : i32
    return %c0_i32, %c0_i32_0 : i32, i32
  }
  func.func @transform_4(%arg0: i32) -> (i32, i32) {
    %c0_i32 = arith.constant 0 : i32
    %c0_i32_0 = arith.constant 0 : i32
    %c0_i32_1 = arith.constant 0 : i32
    return %c0_i32, %c0_i32_0 : i32, i32
  }
  func.func @transform_5(%arg0: i32) -> (i32, i32) {
    %c0_i32 = arith.constant 0 : i32
    %c0_i32_0 = arith.constant 0 : i32
    %c0_i32_1 = arith.constant 0 : i32
    return %c0_i32, %c0_i32_0 : i32, i32
  }
  func.func @transform_6(%arg0: i32) -> (i32, i32) {
    %c0_i32 = arith.constant 0 : i32
    %c0_i32_0 = arith.constant 0 : i32
    %c0_i32_1 = arith.constant 0 : i32
    return %c0_i32, %c0_i32_0 : i32, i32
  }
  func.func @transform_7(%arg0: i32) -> (i32, i32) {
    %c0_i32 = arith.constant 0 : i32
    %c0_i32_0 = arith.constant 0 : i32
    return %c0_i32, %arg0 : i32, i32
  }
}

module attributes {stable_mosaic.version = 11 : i64} {
  func.func @_mlp_head_kernel(%arg0: i32, %arg1: memref<8x32xf32, #tpu.memory_space<vmem>>, %arg2: memref<32x16xbf16, #tpu.memory_space<vmem>>, %arg3: memref<1x16xf32, #tpu.memory_space<vmem>>, %arg4: memref<16x8xbf16, #tpu.memory_space<vmem>>, %arg5: memref<1x8xf32, #tpu.memory_space<vmem>>, %arg6: memref<1x8xbf16, #tpu.memory_space<vmem>>, %arg7: memref<1x1xf32, #tpu.memory_space<vmem>>, %arg8: memref<1x8xf32, #tpu.memory_space<vmem>>) attributes {dimension_semantics = [#tpu.dimension_semantics<parallel>], iteration_bounds = array<i64: 1>, scalar_prefetch = 0 : i64, scratch_operands = 0 : i64, tpu.core_type = #tpu.core_type<tc>, window_params = [{transform_indices = @transform_0, window_bounds = array<i64: 8, 32>}, {pipeline_mode = #tpu.pipeline_mode<synchronous>, transform_indices = @transform_1, window_bounds = array<i64: 32, 16>}, {pipeline_mode = #tpu.pipeline_mode<synchronous>, transform_indices = @transform_2, window_bounds = array<i64: 1, 16>}, {pipeline_mode = #tpu.pipeline_mode<synchronous>, transform_indices = @transform_3, window_bounds = array<i64: 16, 8>}, {pipeline_mode = #tpu.pipeline_mode<synchronous>, transform_indices = @transform_4, window_bounds = array<i64: 1, 8>}, {pipeline_mode = #tpu.pipeline_mode<synchronous>, transform_indices = @transform_5, window_bounds = array<i64: 1, 8>}, {pipeline_mode = #tpu.pipeline_mode<synchronous>, transform_indices = @transform_6, window_bounds = array<i64: 1, 1>}, {transform_indices = @transform_7, window_bounds = array<i64: 1, 8>}]} {
    %c0 = arith.constant 0 : index
    %c0_0 = arith.constant 0 : index
    %0 = vector.load %arg1[%c0, %c0_0] : memref<8x32xf32, #tpu.memory_space<vmem>>, vector<8x32xf32>
    %1 = arith.truncf %0 : vector<8x32xf32> to vector<8x32xbf16>
    %c0_1 = arith.constant 0 : index
    %c0_2 = arith.constant 0 : index
    %2 = vector.load %arg2[%c0_1, %c0_2] : memref<32x16xbf16, #tpu.memory_space<vmem>>, vector<32x16xbf16>
    %cst = arith.constant dense<0.000000e+00> : vector<8x16xf32>
    %3 = tpu.matmul %1, %2, %cst {dimension_numbers = #tpu.dot_dimension_numbers<[1], [0], [0], [1], [0, 0, 1, 1], [], []>} : vector<8x32xbf16>, vector<32x16xbf16>, vector<8x16xf32> -> vector<8x16xf32>
    %c0_3 = arith.constant 0 : index
    %c0_4 = arith.constant 0 : index
    %4 = vector.load %arg3[%c0_3, %c0_4] : memref<1x16xf32, #tpu.memory_space<vmem>>, vector<1x16xf32>
    %5 = vector.broadcast %4 : vector<1x16xf32> to vector<8x16xf32>
    %6 = arith.addf %3, %5 : vector<8x16xf32>
    %cst_5 = arith.constant 0.000000e+00 : f32
    %7 = vector.broadcast %cst_5 : f32 to vector<8x16xf32>
    %8 = arith.maximumf %6, %7 : vector<8x16xf32>
    %9 = arith.truncf %8 : vector<8x16xf32> to vector<8x16xbf16>
    %c0_6 = arith.constant 0 : index
    %c0_7 = arith.constant 0 : index
    %10 = vector.load %arg4[%c0_6, %c0_7] : memref<16x8xbf16, #tpu.memory_space<vmem>>, vector<16x8xbf16>
    %cst_8 = arith.constant dense<0.000000e+00> : vector<8x8xf32>
    %11 = tpu.matmul %9, %10, %cst_8 {dimension_numbers = #tpu.dot_dimension_numbers<[1], [0], [0], [1], [0, 0, 1, 1], [], []>} : vector<8x16xbf16>, vector<16x8xbf16>, vector<8x8xf32> -> vector<8x8xf32>
    %c0_9 = arith.constant 0 : index
    %c0_10 = arith.constant 0 : index
    %12 = vector.load %arg5[%c0_9, %c0_10] : memref<1x8xf32, #tpu.memory_space<vmem>>, vector<1x8xf32>
    %13 = vector.broadcast %12 : vector<1x8xf32> to vector<8x8xf32>
    %14 = arith.addf %11, %13 : vector<8x8xf32>
    %cst_11 = arith.constant 0.000000e+00 : f32
    %15 = vector.broadcast %cst_11 : f32 to vector<8x8xf32>
    %16 = arith.maximumf %14, %15 : vector<8x8xf32>
    %c0_12 = arith.constant 0 : index
    %c0_13 = arith.constant 0 : index
    %17 = vector.load %arg6[%c0_12, %c0_13] : memref<1x8xbf16, #tpu.memory_space<vmem>>, vector<1x8xbf16>
    %18 = arith.truncf %16 : vector<8x8xf32> to vector<8x8xbf16>
    %cst_14 = arith.constant dense<0.000000e+00> : vector<1x8xf32>
    %19 = tpu.matmul %17, %18, %cst_14 {dimension_numbers = #tpu.dot_dimension_numbers<[1], [1], [0], [0], [0, 0, 1, 0], [], []>} : vector<1x8xbf16>, vector<8x8xbf16>, vector<1x8xf32> -> vector<1x8xf32>
    %c0_15 = arith.constant 0 : index
    %c0_16 = arith.constant 0 : index
    %20 = vector.load %arg7[%c0_15, %c0_16] : memref<1x1xf32, #tpu.memory_space<vmem>>, vector<1x1xf32>
    %21 = vector.broadcast %20 : vector<1x1xf32> to vector<1x8xf32>
    %22 = arith.addf %19, %21 : vector<1x8xf32>
    %c0_17 = arith.constant 0 : index
    %c0_18 = arith.constant 0 : index
    %23 = vector.load %arg8[%c0_17, %c0_18] : memref<1x8xf32, #tpu.memory_space<vmem>>, vector<1x8xf32>
    tpu.vector_store %arg8[%c0_17, %c0_18], %22 {strides = array<i32>} : memref<1x8xf32, #tpu.memory_space<vmem>>, vector<1x8xf32>,
    return
  }
  func.func @transform_0(%arg0: i32) -> (i32, i32) {
    %c0_i32 = arith.constant 0 : i32
    %c0_i32_0 = arith.constant 0 : i32
    return %arg0, %c0_i32 : i32, i32
  }
  func.func @transform_1(%arg0: i32) -> (i32, i32) {
    %c0_i32 = arith.constant 0 : i32
    %c0_i32_0 = arith.constant 0 : i32
    %c0_i32_1 = arith.constant 0 : i32
    return %c0_i32, %c0_i32_0 : i32, i32
  }
  func.func @transform_2(%arg0: i32) -> (i32, i32) {
    %c0_i32 = arith.constant 0 : i32
    %c0_i32_0 = arith.constant 0 : i32
    %c0_i32_1 = arith.constant 0 : i32
    return %c0_i32, %c0_i32_0 : i32, i32
  }
  func.func @transform_3(%arg0: i32) -> (i32, i32) {
    %c0_i32 = arith.constant 0 : i32
    %c0_i32_0 = arith.constant 0 : i32
    %c0_i32_1 = arith.constant 0 : i32
    return %c0_i32, %c0_i32_0 : i32, i32
  }
  func.func @transform_4(%arg0: i32) -> (i32, i32) {
    %c0_i32 = arith.constant 0 : i32
    %c0_i32_0 = arith.constant 0 : i32
    %c0_i32_1 = arith.constant 0 : i32
    return %c0_i32, %c0_i32_0 : i32, i32
  }
  func.func @transform_5(%arg0: i32) -> (i32, i32) {
    %c0_i32 = arith.constant 0 : i32
    %c0_i32_0 = arith.constant 0 : i32
    %c0_i32_1 = arith.constant 0 : i32
    return %c0_i32, %c0_i32_0 : i32, i32
  }
  func.func @transform_6(%arg0: i32) -> (i32, i32) {
    %c0_i32 = arith.constant 0 : i32
    %c0_i32_0 = arith.constant 0 : i32
    %c0_i32_1 = arith.constant 0 : i32
    return %c0_i32, %c0_i32_0 : i32, i32
  }
  func.func @transform_7(%arg0: i32) -> (i32, i32) {
    %c0_i32 = arith.constant 0 : i32
    %c0_i32_0 = arith.constant 0 : i32
    return %c0_i32, %arg0 : i32, i32
  }
}

</mosaic_0001>

<bundles_post_ra>
// kernel: _forward.1
= control target key start
LH: loop header
LB: loop body
LE: loop exit
PB: predicated region body
PF: predicated region fallthrough
CT: control target
= control target key end

     0   :  { %s386_s0 = inlined_call_operand.vmem [shape: f32[8,32], index: 0, kind: input, shape index: {}]   ;;  %s387_s1 = inlined_call_operand.vmem [shape: bf16[32,16], index: 1, kind: input, shape index: {}]   ;;  %s388_s2 = inlined_call_operand.vmem [shape: f32[1,16], index: 2, kind: input, shape index: {}]   ;;  %s389_s3 = inlined_call_operand.vmem [shape: bf16[16,8], index: 3, kind: input, shape index: {}]   ;;  %s390_s4 = inlined_call_operand.vmem [shape: f32[1,8], index: 4, kind: input, shape index: {}]   ;;  %s391_s5 = inlined_call_operand.vmem [shape: bf16[1,8], index: 5, kind: input, shape index: {}]   ;;  %s392_s6 = inlined_call_operand.<no memory space> [shape: f32[1,1], index: 6, kind: input, shape index: {}]   ;;  %s393_s7 = inlined_call_operand.hbm [shape: f32[1,8], index: 7, kind: output, shape index: {}]  }
   0x1   :  { %v12_v0 = vstv %s392_s6 }
   0x2   :  { %13 = vst [vmem:[#allocation2] sm:$0x1] %v12_v0 }
   0x3   :  { %v276_v1 = vld [vmem:[%s387_s1] sm:$0xff]   ;;  %v303_v2 = vmov 0.0   ;;  %v277_v3 = vld [vmem:[%s387_s1 + $0x8] sm:$0xff]   ;;  %vm304_vm0 = vmmov 0  }
   0x4   :  { %251 = vmatprep.subr.bf16.mxu0 %v303_v2  ;;  %259 = vmatprep.subr.bf16.mxu1 %v303_v2  ;;  %v30_v4 = vld [vmem:[%s386_s0] sm:$0xff] }
   0x5   :  { %252 = vmatpush3.bf16.msra.mxu0 %v276_v1  ;;  %255 = vmatprep.mubr.msk.bf16.mxu0 %vm304_vm0, %v303_v2 }
   0x6   :  { %253 = vmatprep.subr.bf16.mxu0 %v303_v2  ;;  %261 = vmatprep.mubr.msk.bf16.mxu1 %vm304_vm0, %v303_v2 }
   0x7   :  { %14 = vsyncpa [#allocation4], 0  ;;  %v31_v5 = vpack.c.bf16 %v30_v4, %v30_v4  ;;  %vm55_vm1 = vcmask 261120   ;;  %v278_v6 = vld [vmem:[%s389_s3] sm:$0xff]   ;;  %vm116_vm2 = vcmask 130048   ;;  %v305_v16 = vmov 0  }
   0x8   :  { %260 = vmatpush3.bf16.msra.mxu1 %v278_v6  ;;  %v236_v7 = vld [vmem:[%s388_s2] ss:$0 sm:$0xff]  ;;  %275 = vset.pattern.permute.xlu0 %v305_v16  ;;  %vm173_vm3 = vcmask 64512   ;;  %v169_v27 = vlaneseq  ;;  %vm220_vm4 = vcmask 57344  }
   0x9   :  { %254 = vmatpush3.bf16.msra.mxu0 %v277_v3  ;;  %265 = vmatprep.subr.bf16.mxu1 %v303_v2  ;;  %v163_v15 = vld [vmem:[#allocation2] sm:$0x1] }
   0xa   :  { %166 = vperm.xlu0 %275, %v163_v15   ;;  %v240_v17 = vld [vmem:[%s390_s4] ss:$0 sm:$0xff]  ;;  %v170_v28 = vshrl.u32 %v169_v27, 7  ;;  %s306_s4 = smov [#allocation3]  }
   0xb   :  { %v161_v26 = vld [vmem:[%s391_s5] sm:$0x1]  ;;  %s228_s12 = sshll.u32 %s306_s4, 4  ;;  %s229_s12 = int_to_ptr.vmem [resolvable:$true] %s228_s12 }
   0xc   :  { %256 = vmatmul.mubr.msk.bf16.vlgmr.msra.gmra.mrb[0].mxu0 %vm55_vm1, %v31_v5  ;;  %v171_v29 = vsub.s32 0, %v170_v28  ;;  %s279_s13 = scalar_lea.vmem %s229_s12, 16  ;;  %s283_s14 = scalar_lea.vmem %s229_s12, 32 }
   0xd   :  { %p280_p0 = scmp.ne.s32.totalorder %s229_s12, %s279_s13  ;;  %p284_p1 = scmp.lt.s32.totalorder %s229_s12, %s229_s12 }
   0xe   :  { %p285_p2 = scmp.lt.s32.totalorder %s283_s14, %s279_s13 }
  0x10   :  { %p286_p3 = por %p285_p2, %p284_p1 }
  0x12   :  { %p287_p4 = pnand %p286_p3, %p280_p0 }
  0x89   :  { %v167_v30 = vpop.permute.xlu0 %166 }
  0x8a   :  { %v172_v31 = vrot.slane %v167_v30, %v171_v29 }
  0xdf   :  { %v93_v8 = vpop.f32.mrb[0].mxu0 }
  0xe0   :  { %v94_v9 = vadd.f32 %v236_v7, %v93_v8  ;;  %v257_v10 = vpop.f32.mrb[1].mxu0 }
  0xe1   :  { %v96_v11 = vpop.f32.mrb[2].mxu0 }
  0xe2   :  { %v99_v12 = vmax.f32 %v94_v9, 0.0  ;;  %v258_v13 = vpop.f32.mrb[3].mxu0 }
  0xe4   :  { %v100_v14 = vpack.c.bf16 %v99_v12, %v99_v12 }
  0xe6   :  { %262 = vmatmul.mubr.msk.bf16.vlgmr.msra.gmra.mrb[0].mxu1 %vm116_vm2, %v100_v14 }
  0xe7   :  { %267 = vmatprep.mubr.msk.bf16.mxu1 %vm304_vm0, %v303_v2 }
 0x1b9   :  { %v154_v18 = vpop.f32.mrb[0].mxu1 }
 0x1ba   :  { %v155_v19 = vadd.f32 %v240_v17, %v154_v18  ;;  %v263_v20 = vpop.f32.mrb[1].mxu1 }
 0x1bb   :  { %v157_v21 = vpop.f32.mrb[2].mxu1 }
 0x1bc   :  { %v160_v22 = vmax.f32 %v155_v19, 0.0  ;;  %v264_v23 = vpop.f32.mrb[3].mxu1 }
 0x1be   :  { %v162_v24 = vpack.c.bf16 %v160_v22, %v160_v22 }
 0x1c0   :  { %v178_v25 = vsel %vm173_vm3, %v162_v24, 0 }
 0x1c1   :  { %266 = vmatpush3.bf16.xpose.msra.mxu1 %v178_v25 }
 0x1c8   :  { %268 = vmatmul.mubr.msk.bf16.vlgmr.msra.gmra.mrb[4].mxu1 %vm173_vm3, %v161_v26 }
 0x29b   :  { %v214_v32 = vpop.f32.mrb[4].mxu1 }
 0x29c   :  { %v215_v33 = vadd.f32 %v214_v32, %v172_v31  ;;  %v269_v34 = vpop.f32.mrb[5].mxu1 }
 0x29d   :  { %v217_v35 = vpop.f32.mrb[6].mxu1 }
 0x29e   :  { %v270_v36 = vpop.f32.mrb[7].mxu1  ;;  %221 = vst.msk [vmem:[#allocation3] sm:$0x1] %vm220_vm4, %v215_v33 }
 0x29f   :  { %290 = shalt.err (!%p287_p4)
}
 0x2a0   :  { %s291_s16 = scalar_lea.hbm %s393_s7, 16 }
 0x2a1   :  { %p292_p5 = scmp.ne.s32.totalorder %s393_s7, %s291_s16  ;;  %p295_p6 = scmp.lt.u32.totalorder %s291_s16, %s393_s7 }
 0x2a3   :  { %p297_p7 = pnand %p295_p6, %p292_p5 }
 0x2a5   :  { %300 = shalt.err (!%p297_p7)
}
 0x2a6   :  { %231 = dma.vmem_to_hbm [thread:$0]  %s229_s12, 16, %s393_s7, [#allocation4]  }
 0x2a7   :  { %301 = dma.done.wait [#allocation4], 16  }
 0x2a8   :  { %302 = vsyncadd [#allocation4], 4294967280 }
 0x2a9   :  { %235 = vsyncpa [#allocation4], 1 }

// kernel: _forward.1
= control target key start
LH: loop header
LB: loop body
LE: loop exit
PB: predicated region body
PF: predicated region fallthrough
CT: control target
= control target key end

     0   :  { %s386_s0 = inlined_call_operand.vmem [shape: f32[8,32], index: 0, kind: input, shape index: {}]   ;;  %s387_s1 = inlined_call_operand.vmem [shape: bf16[32,16], index: 1, kind: input, shape index: {}]   ;;  %s388_s2 = inlined_call_operand.vmem [shape: f32[1,16], index: 2, kind: input, shape index: {}]   ;;  %s389_s3 = inlined_call_operand.vmem [shape: bf16[16,8], index: 3, kind: input, shape index: {}]   ;;  %s390_s4 = inlined_call_operand.vmem [shape: f32[1,8], index: 4, kind: input, shape index: {}]   ;;  %s391_s5 = inlined_call_operand.vmem [shape: bf16[1,8], index: 5, kind: input, shape index: {}]   ;;  %s392_s6 = inlined_call_operand.<no memory space> [shape: f32[1,1], index: 6, kind: input, shape index: {}]   ;;  %s393_s7 = inlined_call_operand.hbm [shape: f32[1,8], index: 7, kind: output, shape index: {}]  }
   0x1   :  { %v12_v0 = vstv %s392_s6 }
   0x2   :  { %13 = vst [vmem:[#allocation2] sm:$0x1] %v12_v0 }
   0x3   :  { %v276_v1 = vld [vmem:[%s387_s1] sm:$0xff]   ;;  %v303_v2 = vmov 0.0   ;;  %v277_v3 = vld [vmem:[%s387_s1 + $0x8] sm:$0xff]   ;;  %vm304_vm0 = vmmov 0  }
   0x4   :  { %251 = vmatprep.subr.bf16.mxu0 %v303_v2  ;;  %259 = vmatprep.subr.bf16.mxu1 %v303_v2  ;;  %v30_v4 = vld [vmem:[%s386_s0] sm:$0xff] }
   0x5   :  { %252 = vmatpush3.bf16.msra.mxu0 %v276_v1  ;;  %255 = vmatprep.mubr.msk.bf16.mxu0 %vm304_vm0, %v303_v2 }
   0x6   :  { %253 = vmatprep.subr.bf16.mxu0 %v303_v2  ;;  %261 = vmatprep.mubr.msk.bf16.mxu1 %vm304_vm0, %v303_v2 }
   0x7   :  { %14 = vsyncpa [#allocation4], 0  ;;  %v31_v5 = vpack.c.bf16 %v30_v4, %v30_v4  ;;  %vm55_vm1 = vcmask 261120   ;;  %v278_v6 = vld [vmem:[%s389_s3] sm:$0xff]   ;;  %vm116_vm2 = vcmask 130048   ;;  %v305_v16 = vmov 0  }
   0x8   :  { %260 = vmatpush3.bf16.msra.mxu1 %v278_v6  ;;  %v236_v7 = vld [vmem:[%s388_s2] ss:$0 sm:$0xff]  ;;  %275 = vset.pattern.permute.xlu0 %v305_v16  ;;  %vm173_vm3 = vcmask 64512   ;;  %v169_v27 = vlaneseq  ;;  %vm220_vm4 = vcmask 57344  }
   0x9   :  { %254 = vmatpush3.bf16.msra.mxu0 %v277_v3  ;;  %265 = vmatprep.subr.bf16.mxu1 %v303_v2  ;;  %v163_v15 = vld [vmem:[#allocation2] sm:$0x1] }
   0xa   :  { %166 = vperm.xlu0 %275, %v163_v15   ;;  %v240_v17 = vld [vmem:[%s390_s4] ss:$0 sm:$0xff]  ;;  %v170_v28 = vshrl.u32 %v169_v27, 7  ;;  %s306_s4 = smov [#allocation3]  }
   0xb   :  { %v161_v26 = vld [vmem:[%s391_s5] sm:$0x1]  ;;  %s228_s12 = sshll.u32 %s306_s4, 4  ;;  %s229_s12 = int_to_ptr.vmem [resolvable:$true] %s228_s12 }
   0xc   :  { %256 = vmatmul.mubr.msk.bf16.vlgmr.msra.gmra.mrb[0].mxu0 %vm55_vm1, %v31_v5  ;;  %v171_v29 = vsub.s32 0, %v170_v28  ;;  %s279_s13 = scalar_lea.vmem %s229_s12, 16  ;;  %s283_s14 = scalar_lea.vmem %s229_s12, 32 }
   0xd   :  { %p280_p0 = scmp.ne.s32.totalorder %s229_s12, %s279_s13  ;;  %p284_p1 = scmp.lt.s32.totalorder %s229_s12, %s229_s12 }
   0xe   :  { %p285_p2 = scmp.lt.s32.totalorder %s283_s14, %s279_s13 }
  0x10   :  { %p286_p3 = por %p285_p2, %p284_p1 }
  0x12   :  { %p287_p4 = pnand %p286_p3, %p280_p0 }
  0x89   :  { %v167_v30 = vpop.permute.xlu0 %166 }
  0x8a   :  { %v172_v31 = vrot.slane %v167_v30, %v171_v29 }
  0xdf   :  { %v93_v8 = vpop.f32.mrb[0].mxu0 }
  0xe0   :  { %v94_v9 = vadd.f32 %v236_v7, %v93_v8  ;;  %v257_v10 = vpop.f32.mrb[1].mxu0 }
  0xe1   :  { %v96_v11 = vpop.f32.mrb[2].mxu0 }
  0xe2   :  { %v99_v12 = vmax.f32 %v94_v9, 0.0  ;;  %v258_v13 = vpop.f32.mrb[3].mxu0 }
  0xe4   :  { %v100_v14 = vpack.c.bf16 %v99_v12, %v99_v12 }
  0xe6   :  { %262 = vmatmul.mubr.msk.bf16.vlgmr.msra.gmra.mrb[0].mxu1 %vm116_vm2, %v100_v14 }
  0xe7   :  { %267 = vmatprep.mubr.msk.bf16.mxu1 %vm304_vm0, %v303_v2 }
 0x1b9   :  { %v154_v18 = vpop.f32.mrb[0].mxu1 }
 0x1ba   :  { %v155_v19 = vadd.f32 %v240_v17, %v154_v18  ;;  %v263_v20 = vpop.f32.mrb[1].mxu1 }
 0x1bb   :  { %v157_v21 = vpop.f32.mrb[2].mxu1 }
 0x1bc   :  { %v160_v22 = vmax.f32 %v155_v19, 0.0  ;;  %v264_v23 = vpop.f32.mrb[3].mxu1 }
 0x1be   :  { %v162_v24 = vpack.c.bf16 %v160_v22, %v160_v22 }
 0x1c0   :  { %v178_v25 = vsel %vm173_vm3, %v162_v24, 0 }
 0x1c1   :  { %266 = vmatpush3.bf16.xpose.msra.mxu1 %v178_v25 }
 0x1c8   :  { %268 = vmatmul.mubr.msk.bf16.vlgmr.msra.gmra.mrb[4].mxu1 %vm173_vm3, %v161_v26 }
 0x29b   :  { %v214_v32 = vpop.f32.mrb[4].mxu1 }
 0x29c   :  { %v215_v33 = vadd.f32 %v214_v32, %v172_v31  ;;  %v269_v34 = vpop.f32.mrb[5].mxu1 }
 0x29d   :  { %v217_v35 = vpop.f32.mrb[6].mxu1 }
 0x29e   :  { %v270_v36 = vpop.f32.mrb[7].mxu1  ;;  %221 = vst.msk [vmem:[#allocation3] sm:$0x1] %vm220_vm4, %v215_v33 }
 0x29f   :  { %290 = shalt.err (!%p287_p4)
}
 0x2a0   :  { %s291_s16 = scalar_lea.hbm %s393_s7, 16 }
 0x2a1   :  { %p292_p5 = scmp.ne.s32.totalorder %s393_s7, %s291_s16  ;;  %p295_p6 = scmp.lt.u32.totalorder %s291_s16, %s393_s7 }
 0x2a3   :  { %p297_p7 = pnand %p295_p6, %p292_p5 }
 0x2a5   :  { %300 = shalt.err (!%p297_p7)
}
 0x2a6   :  { %231 = dma.vmem_to_hbm [thread:$0]  %s229_s12, 16, %s393_s7, [#allocation4]  }
 0x2a7   :  { %301 = dma.done.wait [#allocation4], 16  }
 0x2a8   :  { %302 = vsyncadd [#allocation4], 4294967280 }
 0x2a9   :  { %235 = vsyncpa [#allocation4], 1 }

</bundles_post_ra>
